<compile_context>
chip_gen: v5e
topology: v5e:2x2
jax: 0.10.0
libtpu: 0.0.40
codegen_flags: <defaults>
</compile_context>

<pallas_src>
import math

import jax
import jax.numpy as jnp
from jax.experimental import pallas as pl
from jax.experimental.pallas import tpu as pltpu


# ----------------------------------------------------------------------------
# Kernels
# ----------------------------------------------------------------------------
def _fc_kernel_single(x_ref, w_ref, b_ref, o_ref):
    # One M-tile of  out = x @ W + b
    #   x_ref : [tm, K]      w_ref : [K, Coutp]      b_ref : [1, Coutp]
    #   o_ref : [tm, Coutp]  (lane-dense, Coutp % 128 == 0)
    o_ref[...] = (jnp.dot(x_ref[...], w_ref[...],
                          preferred_element_type=jnp.float32)
                  + b_ref[...])


def _fc_kernel_pair(xr_ref, xi_ref, w_ref, b_ref, or_ref, oi_ref):
    # Complex path: real and imaginary planes share the same W, b.
    # Two dots against the resident weight tile; the kernel is HBM-bound so
    # per-dot MXU start-up is negligible, and two planar outputs avoid any
    # post-kernel slice-apart pass over the dominant output stream.
    w = w_ref[...]
    b = b_ref[...]
    or_ref[...] = jnp.dot(xr_ref[...], w, preferred_element_type=jnp.float32) + b
    oi_ref[...] = jnp.dot(xi_ref[...], w, preferred_element_type=jnp.float32) + b


_COMPILER_PARAMS = pltpu.CompilerParams(
    dimension_semantics=("parallel",),        # M axis; v7x shards across 2 TCs
    vmem_limit_bytes=32 * 1024 * 1024,        # raise v5e's ~16 MiB default
)


# ----------------------------------------------------------------------------
# Tile-size selection
# ----------------------------------------------------------------------------
def _pick_tm(M, bytes_per_row, *, tm_max=2048, min_steps=4,
             vmem_budget=24 * 1024 * 1024):
    """Pick the M tile: as large as possible (amortize per-grid-step cost),
    multiple of 8, bounded by a VMEM budget for the double-buffered tiles,
    keeping >= min_steps grid steps when M allows (v7x megacore), and
    re-balanced so the final tile is not mostly padding."""
    Mp8 = pl.cdiv(M, 8) * 8
    tm_vmem = max(8, (vmem_budget // (2 * bytes_per_row)) // 8 * 8)
    tm = min(tm_max, tm_vmem, Mp8, pl.cdiv(pl.cdiv(M, min_steps), 8) * 8)
    tm = max(tm, min(128, Mp8, tm_vmem))      # floor for tiny inputs
    steps = pl.cdiv(M, tm)
    tm = max(8, pl.cdiv(pl.cdiv(M, steps), 8) * 8)   # balance -> minimal pad
    return tm


def _pad_rows(x2d, Mp):
    M = x2d.shape[0]
    if Mp != M:
        x2d = jnp.pad(x2d, ((0, Mp - M), (0, 0)))
    return x2d


# ----------------------------------------------------------------------------
# pallas_call wrappers
# ----------------------------------------------------------------------------
def _linear_single(x2d, w_m, b_m, tm):
    M, K = x2d.shape
    coutp = w_m.shape[1]
    Mp = pl.cdiv(M, tm) * tm
    x2d = _pad_rows(x2d, Mp)
    out = pl.pallas_call(
        _fc_kernel_single,
        out_shape=jax.ShapeDtypeStruct((Mp, coutp), jnp.float32),
        grid_spec=pltpu.PrefetchScalarGridSpec(
            num_scalar_prefetch=0,
            grid=(Mp // tm,),
            in_specs=[
                pl.BlockSpec((tm, K), lambda i: (i, 0)),      # full-K block
                pl.BlockSpec((K, coutp), lambda i: (0, 0)),   # weights resident
                pl.BlockSpec((1, coutp), lambda i: (0, 0)),   # bias resident
            ],
            out_specs=pl.BlockSpec((tm, coutp), lambda i: (i, 0)),
        ),
        compiler_params=_COMPILER_PARAMS,
    )(x2d, w_m, b_m)
    return out[:M] if Mp != M else out


def _linear_pair(xr2d, xi2d, w_m, b_m, tm):
    M, K = xr2d.shape
    coutp = w_m.shape[1]
    Mp = pl.cdiv(M, tm) * tm
    xr2d = _pad_rows(xr2d, Mp)
    xi2d = _pad_rows(xi2d, Mp)
    out_r, out_i = pl.pallas_call(
        _fc_kernel_pair,
        out_shape=(jax.ShapeDtypeStruct((Mp, coutp), jnp.float32),
                   jax.ShapeDtypeStruct((Mp, coutp), jnp.float32)),
        grid_spec=pltpu.PrefetchScalarGridSpec(
            num_scalar_prefetch=0,
            grid=(Mp // tm,),
            in_specs=[
                pl.BlockSpec((tm, K), lambda i: (i, 0)),
                pl.BlockSpec((tm, K), lambda i: (i, 0)),
                pl.BlockSpec((K, coutp), lambda i: (0, 0)),
                pl.BlockSpec((1, coutp), lambda i: (0, 0)),
            ],
            out_specs=[pl.BlockSpec((tm, coutp), lambda i: (i, 0)),
                       pl.BlockSpec((tm, coutp), lambda i: (i, 0))],
        ),
        compiler_params=_COMPILER_PARAMS,
    )(xr2d, xi2d, w_m, b_m)
    if Mp != M:
        out_r, out_i = out_r[:M], out_i[:M]
    return out_r, out_i


# ----------------------------------------------------------------------------
# Parameter preparation (hoisted out of the hot path) + forward
# ----------------------------------------------------------------------------
def fc_prepare(weight, bias):
    """Pad/transpose nn.Linear params once, at parameter-prep time.

    weight : [out_chans, in_chans],  bias : [out_chans]
    returns (w_m [K, Coutp], b_m [1, Coutp], out_chans) with Coutp % 128 == 0.
    """
    out_chans, in_chans = weight.shape
    coutp = pl.cdiv(out_chans, 128) * 128
    w_m = weight.astype(jnp.float32).T                        # [K, Cout]
    b_m = bias.astype(jnp.float32).reshape(1, out_chans)
    if coutp != out_chans:
        w_m = jnp.pad(w_m, ((0, 0), (0, coutp - out_chans)))
        b_m = jnp.pad(b_m, ((0, 0), (0, coutp - out_chans)))
    return w_m, b_m, out_chans


def fc_apply_planar(x, params, *, tm=None):
    """Complex-path variant returning planar (out_real, out_imag) without the
    final interleave; use this when downstream can consume planar tensors."""
    w_m, b_m, out_chans = params
    in_chans, coutp = w_m.shape
    assert x.shape[-1] == in_chans
    lead = x.shape[:-1]
    M = math.prod(lead) if lead else 1

    xr = jnp.real(x).astype(jnp.float32).reshape(M, in_chans)
    xi = jnp.imag(x).astype(jnp.float32).reshape(M, in_chans)
    if tm is None:
        tm = _pick_tm(M, 4 * (2 * in_chans + 2 * coutp))
    out_r, out_i = _linear_pair(xr, xi, w_m, b_m, tm)
    if coutp != out_chans:
        out_r = out_r[:, :out_chans]
        out_i = out_i[:, :out_chans]
    return (out_r.reshape(*lead, out_chans),
            out_i.reshape(*lead, out_chans))


def fc_apply(x, params, *, tm=None):
    """FC.forward with pre-prepared params (see fc_prepare)."""
    w_m, b_m, out_chans = params
    in_chans, coutp = w_m.shape
    assert x.shape[-1] == in_chans
    lead = x.shape[:-1]
    M = math.prod(lead) if lead else 1

    if jnp.iscomplexobj(x):
        out_r, out_i = fc_apply_planar(x, params, tm=tm)
        # TODO(synk): lax.complex interleave stays in the wrapper — Mosaic has
        # no complex dtype; consumers that accept planar tensors should call
        # fc_apply_planar() and skip this pass.
        return jax.lax.complex(out_r, out_i)

    x2d = x.astype(jnp.float32).reshape(M, in_chans)
    if tm is None:
        tm = _pick_tm(M, 4 * (in_chans + coutp))
    out = _linear_single(x2d, w_m, b_m, tm)
    if coutp != out_chans:
        out = out[:, :out_chans]
    return out.reshape(*lead, out_chans)


def fc_forward(x, weight, bias, *, tm=None):
    """Convenience one-shot wrapper (prepares params on every call)."""
    return fc_apply(x, fc_prepare(weight, bias), tm=tm)


# ----------------------------------------------------------------------------
# Reference (pure JAX) for validation.
# ----------------------------------------------------------------------------
def fc_forward_ref(x, weight, bias):
    def lin(v):
        return jnp.einsum("...k,ok->...o", v.astype(jnp.float32), weight,
                          precision=jax.lax.Precision.HIGHEST) + bias
    if jnp.iscomplexobj(x):
        return jax.lax.complex(lin(jnp.real(x)), lin(jnp.imag(x)))
    return lin(x)


if __name__ == "__main__":
    key = jax.random.PRNGKey(0)
    k1, k2, k3, k4, k5, k6 = jax.random.split(key, 6)

    # Small shapes consistent with the module: FC over the last (hidden) dim.
    batch, seq, spatial = 2, 16, 32
    in_chans, out_chans = 32, 128
    x_shape = (batch, seq, spatial, in_chans)

    scale = 1.0 / (in_chans ** 0.5)
    w = scale * jax.random.normal(k1, (out_chans, in_chans), jnp.float32)
    b = scale * jax.random.normal(k2, (out_chans,), jnp.float32)

    x_real = jax.random.normal(k3, x_shape, jnp.float32)
    x_imag = jax.random.normal(k4, x_shape, jnp.float32)
    x = jax.lax.complex(x_real, x_imag)                  # complex64 input

    # --- complex path (params prepared once, out_chans % 128 == 0: no pad) ---
    params = fc_prepare(w, b)
    out = jax.block_until_ready(fc_apply(x, params))
    ref = jax.block_until_ready(fc_forward_ref(x, w, b))
    assert out.shape == x_shape[:-1] + (out_chans,)
    assert out.dtype == jnp.complex64
    if not (jnp.allclose(jnp.real(out), jnp.real(ref), atol=1e-4, rtol=1e-4)
            and jnp.allclose(jnp.imag(out), jnp.imag(ref), atol=1e-4, rtol=1e-4)):
        raise AssertionError("Pallas FC (complex path) mismatch vs reference")

    # --- real path, non-128-aligned out_chans to exercise Cout padding ------
    oc2 = 48
    w2 = 0.1 * jax.random.normal(k5, (oc2, in_chans), jnp.float32)
    b2 = 0.1 * jax.random.normal(k6, (oc2,), jnp.float32)
    out2 = jax.block_until_ready(fc_forward(x_real, w2, b2))
    ref2 = jax.block_until_ready(fc_forward_ref(x_real, w2, b2))
    assert out2.shape == x_shape[:-1] + (oc2,) and out2.dtype == jnp.float32
    if not jnp.allclose(out2, ref2, atol=1e-4, rtol=1e-4):
        raise AssertionError("Pallas FC (real path) mismatch vs reference")

    # --- M not divisible by the tile, to exercise row padding ---------------
    x3 = jax.random.normal(k3, (3, 7, 5, in_chans), jnp.float32)
    out3 = jax.block_until_ready(fc_apply(x3, params))
    ref3 = jax.block_until_ready(fc_forward_ref(x3, w, b))
    if not jnp.allclose(out3, ref3, atol=1e-4, rtol=1e-4):
        raise AssertionError("Pallas FC (ragged-M path) mismatch vs reference")

    print("KERNEL_OK")
</pallas_src>

<mosaic_0001>
module attributes {stable_mosaic.version = 11 : i64} {
  func.func @_fc_kernel_pair(%arg0: i32, %arg1: memref<256x32xf32, #tpu.memory_space<vmem>>, %arg2: memref<256x32xf32, #tpu.memory_space<vmem>>, %arg3: memref<32x128xf32, #tpu.memory_space<vmem>>, %arg4: memref<1x128xf32, #tpu.memory_space<vmem>>, %arg5: memref<256x128xf32, #tpu.memory_space<vmem>>, %arg6: memref<256x128xf32, #tpu.memory_space<vmem>>) attributes {dimension_semantics = [#tpu.dimension_semantics<parallel>], iteration_bounds = array<i64: 4>, scalar_prefetch = 0 : i64, scratch_operands = 0 : i64, tpu.core_type = #tpu.core_type<tc>, window_params = [{transform_indices = @transform_0, window_bounds = array<i64: 256, 32>}, {transform_indices = @transform_1, window_bounds = array<i64: 256, 32>}, {pipeline_mode = #tpu.pipeline_mode<synchronous>, transform_indices = @transform_2, window_bounds = array<i64: 32, 128>}, {pipeline_mode = #tpu.pipeline_mode<synchronous>, transform_indices = @transform_3, window_bounds = array<i64: 1, 128>}, {transform_indices = @transform_4, window_bounds = array<i64: 256, 128>}, {transform_indices = @transform_5, window_bounds = array<i64: 256, 128>}]} {
    %c0 = arith.constant 0 : index
    %c0_0 = arith.constant 0 : index
    %0 = vector.load %arg3[%c0, %c0_0] : memref<32x128xf32, #tpu.memory_space<vmem>>, vector<32x128xf32>
    %c0_1 = arith.constant 0 : index
    %c0_2 = arith.constant 0 : index
    %1 = vector.load %arg4[%c0_1, %c0_2] : memref<1x128xf32, #tpu.memory_space<vmem>>, vector<1x128xf32>
    %c0_3 = arith.constant 0 : index
    %c0_4 = arith.constant 0 : index
    %2 = vector.load %arg1[%c0_3, %c0_4] : memref<256x32xf32, #tpu.memory_space<vmem>>, vector<256x32xf32>
    %cst = arith.constant dense<0.000000e+00> : vector<256x128xf32>
    %3 = tpu.matmul %2, %0, %cst {dimension_numbers = #tpu.dot_dimension_numbers<[1], [0], [0], [1], [0, 0, 1, 1], [], []>} : vector<256x32xf32>, vector<32x128xf32>, vector<256x128xf32> -> vector<256x128xf32>
    %4 = vector.broadcast %1 : vector<1x128xf32> to vector<256x128xf32>
    %5 = arith.addf %3, %4 : vector<256x128xf32>
    %c0_5 = arith.constant 0 : index
    %c0_6 = arith.constant 0 : index
    %6 = vector.load %arg5[%c0_5, %c0_6] : memref<256x128xf32, #tpu.memory_space<vmem>>, vector<256x128xf32>
    tpu.vector_store %arg5[%c0_5, %c0_6], %5 {strides = array<i32>} : memref<256x128xf32, #tpu.memory_space<vmem>>, vector<256x128xf32>,
    %c0_7 = arith.constant 0 : index
    %c0_8 = arith.constant 0 : index
    %7 = vector.load %arg2[%c0_7, %c0_8] : memref<256x32xf32, #tpu.memory_space<vmem>>, vector<256x32xf32>
    %cst_9 = arith.constant dense<0.000000e+00> : vector<256x128xf32>
    %8 = tpu.matmul %7, %0, %cst_9 {dimension_numbers = #tpu.dot_dimension_numbers<[1], [0], [0], [1], [0, 0, 1, 1], [], []>} : vector<256x32xf32>, vector<32x128xf32>, vector<256x128xf32> -> vector<256x128xf32>
    %9 = vector.broadcast %1 : vector<1x128xf32> to vector<256x128xf32>
    %10 = arith.addf %8, %9 : vector<256x128xf32>
    %c0_10 = arith.constant 0 : index
    %c0_11 = arith.constant 0 : index
    %11 = vector.load %arg6[%c0_10, %c0_11] : memref<256x128xf32, #tpu.memory_space<vmem>>, vector<256x128xf32>
    tpu.vector_store %arg6[%c0_10, %c0_11], %10 {strides = array<i32>} : memref<256x128xf32, #tpu.memory_space<vmem>>, vector<256x128xf32>,
    return
  }
  func.func @transform_0(%arg0: i32) -> (i32, i32) {
    %c0_i32 = arith.constant 0 : i32
    %c0_i32_0 = arith.constant 0 : i32
    return %arg0, %c0_i32 : i32, i32
  }
  func.func @transform_1(%arg0: i32) -> (i32, i32) {
    %c0_i32 = arith.constant 0 : i32
    %c0_i32_0 = arith.constant 0 : i32
    return %arg0, %c0_i32 : i32, i32
  }
  func.func @transform_2(%arg0: i32) -> (i32, i32) {
    %c0_i32 = arith.constant 0 : i32
    %c0_i32_0 = arith.constant 0 : i32
    %c0_i32_1 = arith.constant 0 : i32
    return %c0_i32, %c0_i32_0 : i32, i32
  }
  func.func @transform_3(%arg0: i32) -> (i32, i32) {
    %c0_i32 = arith.constant 0 : i32
    %c0_i32_0 = arith.constant 0 : i32
    %c0_i32_1 = arith.constant 0 : i32
    return %c0_i32, %c0_i32_0 : i32, i32
  }
  func.func @transform_4(%arg0: i32) -> (i32, i32) {
    %c0_i32 = arith.constant 0 : i32
    %c0_i32_0 = arith.constant 0 : i32
    return %arg0, %c0_i32 : i32, i32
  }
  func.func @transform_5(%arg0: i32) -> (i32, i32) {
    %c0_i32 = arith.constant 0 : i32
    %c0_i32_0 = arith.constant 0 : i32
    return %arg0, %c0_i32 : i32, i32
  }
}

</mosaic_0001>

<bundles_post_ra>
// kernel: tpu_custom_call.1
= control target key start
LH: loop header
LB: loop body
LE: loop exit
PB: predicated region body
PF: predicated region fallthrough
CT: control target
= control target key end

     0   :  { %11 = vsyncpa [#allocation3], 0  ;;  %s1625_s0 = inlined_call_operand.vmem [shape: f32[1024,32], index: 0, kind: input, shape index: {}]   ;;  %s1626_s1 = inlined_call_operand.vmem [shape: f32[1024,32], index: 1, kind: input, shape index: {}]   ;;  %s1627_s2 = inlined_call_operand.vmem [shape: f32[32,128], index: 2, kind: input, shape index: {}]   ;;  %s1628_s3 = inlined_call_operand.vmem [shape: f32[1,128], index: 3, kind: input, shape index: {}]   ;;  %s1629_s4 = inlined_call_operand.hbm [shape: f32[1024,128], index: 4, kind: output, shape index: {0}]   ;;  %s1630_s5 = inlined_call_operand.hbm [shape: f32[1024,128], index: 5, kind: output, shape index: {1}]  }
   0x1   :  { %13 = vsyncpa [#allocation3 + $0x1], 0 }
   0x2   :  { %14 = vsyncpa [#allocation5], 0 }
   0x3   :  { %16 = vsyncpa [#allocation5 + $0x1], 0  ;;  %s1227_s18 = smov 0   ;;  %s1229_s19 = smov 0  }
   0x4   :  { %s1231_s20 = smov 0   ;;  %s1233_s21 = smov 0  }
   0x5 LB: > { %s1248_s22 = sadd.s32 4294967295, %s1193_s21   ;;  %s960_s23 = sadd.s32 4294967294, %s1193_s21   ;;  %s1193_s21 = sphi %s1233_s21, %s1636_s21   ;;  %s1189_s20 = sphi %s1231_s20, %s1635_s20   ;;  %s1185_s19 = sphi %s1229_s19, %s1634_s19   ;;  %s1181_s18 = sphi %s1227_s18, %s1633_s18  }
   0x6   : > { %s1252_s24 = sadd.s32 1, %s1193_s21   ;;  %s123_s25 = sadd.s32 1, %s1189_s20 }
   0x7   : > { %s120_s26 = ssub.s32 %s1193_s21, %s1252_s24  ;;  %p133_p0 = scmp.ne.s32.totalorder %s1189_s20, %s1185_s19 }
   0x8   : > { %p121_p1 = scmp.eq.s32.totalorder %s120_s26, 0  ;;  %p134_p2 = scmp.eq.s32.totalorder %s1248_s22, 3 }
   0x9   : > { %p139_p3 = scmp.ne.s32.totalorder %s1185_s19, %s1181_s18  ;;  %p140_p4 = scmp.eq.s32.totalorder %s960_s23, 3 }
   0xa   : > { %s1263_s27 = scalar_select %p121_p1, %s1189_s20, %s123_s25  }
   0xb   : > { %p1265_p5 = por %p134_p2, %p133_p0  ;;  %p1269_p6 = por %p140_p4, %p139_p3 }
   0xc   : > { %p963_p7 = scmp.ge.s32.totalorder %s1193_s21, 1  ;;  %p208_p8 = scmp.lt.s32.totalorder %s1193_s21, 5 }
   0xe   : > { %p209_p9 = pnand %p963_p7, %p208_p8 }
   0xf   : > { %s966_s9 = sshll.u32 (!%p209_p9), %s1248_s22, 5  ;;  %s1425_s30 = sand.u32 (!%p209_p9), 1, %s1185_s19  }
  0x10   : > { %212 = sbr.rel (%p209_p9) target bundleno = 300 (0x12c), region = 36  ;;  %p247_p10 = scmp.lt.s32.totalorder (!%p209_p9), %s966_s9, 127 }
  0x11   : > { %s964_s6 = sshll.u32 (!%p209_p9), %s1425_s30, 8  ;;  %s1042_s11 = sshll.u32 (!%p209_p9), %s1248_s22, 8 }
  0x12   : > { %s1440_s10 = scalar_lea.vmem (!%p209_p9), [#allocation4], %s964_s6  ;;  %s1119_s13 = scalar_lea.hbm (!%p209_p9), %s1629_s4, 1024 }
  0x13   : > { %s850_s25 = sshll.u32 (!%p209_p9), %s1440_s10, 4  ;;  %s1577_s25 = int_to_ptr.vmem [resolvable:$true] %s850_s25 }
  0x15   : > { %v263_v0 = vld [vmem:[%s1627_s2 + $0x18] sm:$0xff]  ;;  %v262_v1 = vld [vmem:[%s1627_s2 + $0x10] sm:$0xff]  ;;  %v261_v2 = vld [vmem:[%s1627_s2 + $0x8] sm:$0xff]  ;;  %s1638_s9 = smov (!%p247_p10, %s966_s9), 127  ;;  %vm300_vm0 = vcmask 261120  }
  0x16   : > { %1044 = vmatpush.msra.mxu2 %v263_v0  ;;  %1048 = vmatpush.msra.mxu3 %v263_v0  ;;  %v260_v3 = vld [vmem:[%s1627_s2] sm:$0xff]  ;;  %s967_s14 = sshll.u32 %s1638_s9, 3  ;;  %s1437_s9 = scalar_lea.vmem [#allocation2], %s964_s6 }
  0x17   : > { %409 = vmatpush.msra.mxu0 %v263_v0  ;;  %682 = vmatpush.msra.mxu1 %v263_v0  ;;  %s1291_s17 = scalar_lea.vmem %s1625_s0, %s967_s14  ;;  %s1296_s26 = scalar_lea.vmem %s1626_s1, %s967_s14 }
  0x18   : > { %1045 = vmatpush.msra.mxu2 %v262_v1  ;;  %1049 = vmatpush.msra.mxu3 %v262_v1  ;;  %v281_v4 = vld [vmem:[%s1291_s17 + $0x80] sm:$0xff]  ;;  %v282_v8 = vld [vmem:[%s1291_s17 + $0x88] sm:$0xff]  ;;  %v283_v12 = vld [vmem:[%s1291_s17 + $0x90] sm:$0xff]  ;;  %s832_s14 = scalar_lea.hbm %s1629_s4, %s1042_s11  ;;  %s833_s15 = sshll.u32 %s1437_s9, 4  ;;  %s1570_s15 = int_to_ptr.vmem [resolvable:$true] %s833_s15 }
  0x19   : > { %410 = vmatpush.msra.mxu0 %v262_v1  ;;  %683 = vmatpush.msra.mxu1 %v262_v1  ;;  %v558_v5 = vld [vmem:[%s1296_s26 + $0x80] sm:$0xff]  ;;  %v559_v9 = vld [vmem:[%s1296_s26 + $0x88] sm:$0xff]  ;;  %v560_v13 = vld [vmem:[%s1296_s26 + $0x90] sm:$0xff]  ;;  %s835_s23 = sshll.u32 %s832_s14, 4  ;;  %s816_s6 = scalar_lea.sflag [#allocation3], %s1425_s30  ;;  %s836_s23 = int_to_ptr.hbm [resolvable:$true] %s835_s23 }
  0x1a   : > { %1046 = vmatpush.msra.mxu2 %v261_v2  ;;  %1050 = vmatpush.msra.mxu3 %v261_v2  ;;  %v265_v6 = vld [vmem:[%s1291_s17] sm:$0xff]  ;;  %v266_v10 = vld [vmem:[%s1291_s17 + $0x8] sm:$0xff]  ;;  %v267_v14 = vld [vmem:[%s1291_s17 + $0x10] sm:$0xff]  ;;  %s1113_s7 = sshra.s32 %s836_s23, 4  ;;  %s1114_s7 = int_to_ptr.hbm [resolvable:$true] %s1113_s7 }
  0x1b   : > { %411 = vmatpush.msra.mxu0 %v261_v2  ;;  %684 = vmatpush.msra.mxu1 %v261_v2  ;;  %v542_v7 = vld [vmem:[%s1296_s26] sm:$0xff]  ;;  %v543_v11 = vld [vmem:[%s1296_s26 + $0x8] sm:$0xff]  ;;  %v544_v15 = vld [vmem:[%s1296_s26 + $0x10] sm:$0xff]  ;;  %s1115_s8 = scalar_lea.hbm %s1114_s7, 256  ;;  %p1120_p0 = scmp.lt.s32.totalorder %s1114_s7, %s1629_s4 }
  0x1c   : > { %1047 = vmatpush.msra.mxu2 %v260_v3  ;;  %1051 = vmatpush.msra.mxu3 %v260_v3  ;;  %v284_v16 = vld [vmem:[%s1291_s17 + $0x98] sm:$0xff]  ;;  %v285_v20 = vld [vmem:[%s1291_s17 + $0xa0] sm:$0xff]  ;;  %v286_v24 = vld [vmem:[%s1291_s17 + $0xa8] sm:$0xff]  ;;  %p1116_p11 = scmp.ne.s32.totalorder %s1114_s7, %s1115_s8  ;;  %p1121_p1 = scmp.lt.s32.totalorder %s1119_s13, %s1115_s8 }
  0x1d   : > { %986 = vmatmul.msk.f32.vlgmr.msra.gmra.mxu2 %vm300_vm0, %v281_v4  ;;  %1018 = vmatmul.msk.f32.vlgmr.msra.gmra.mxu3 %vm300_vm0, %v558_v5  ;;  %v561_v17 = vld [vmem:[%s1296_s26 + $0x98] sm:$0xff]  ;;  %v562_v21 = vld [vmem:[%s1296_s26 + $0xa0] sm:$0xff]  ;;  %v563_v25 = vld [vmem:[%s1296_s26 + $0xa8] sm:$0xff] }
  0x1e   : > { %412 = vmatpush.msra.mxu0 %v260_v3  ;;  %685 = vmatpush.msra.mxu1 %v260_v3  ;;  %v268_v18 = vld [vmem:[%s1291_s17 + $0x18] sm:$0xff]  ;;  %v269_v22 = vld [vmem:[%s1291_s17 + $0x20] sm:$0xff]  ;;  %v270_v26 = vld [vmem:[%s1291_s17 + $0x28] sm:$0xff]  ;;  %p1117_p12 = pnand %p1116_p11, %p1265_p5  ;;  %p1122_p2 = por %p1121_p1, %p1120_p0 }
  0x1f   : > { %970 = vmatmul.msk.f32.vlgmr.msra.gmra.mxu0 %vm300_vm0, %v265_v6  ;;  %1002 = vmatmul.msk.f32.vlgmr.msra.gmra.mxu1 %vm300_vm0, %v542_v7  ;;  %v545_v19 = vld [vmem:[%s1296_s26 + $0x18] sm:$0xff]  ;;  %v546_v23 = vld [vmem:[%s1296_s26 + $0x20] sm:$0xff]  ;;  %v547_v27 = vld [vmem:[%s1296_s26 + $0x28] sm:$0xff] }
  0x20   : > { %v287_v28 = vld [vmem:[%s1291_s17 + $0xb0] sm:$0xff]  ;;  %v288_v32 = vld [vmem:[%s1291_s17 + $0xb8] sm:$0xff]  ;;  %v289_v36 = vld [vmem:[%s1291_s17 + $0xc0] sm:$0xff]  ;;  %p1118_p13 = pneg %p1117_p12 }
  0x21   : > { %v564_v29 = vld [vmem:[%s1296_s26 + $0xb0] sm:$0xff]  ;;  %v565_v33 = vld [vmem:[%s1296_s26 + $0xb8] sm:$0xff]  ;;  %v566_v37 = vld [vmem:[%s1296_s26 + $0xc0] sm:$0xff] }
  0x22   : > { %v271_v30 = vld [vmem:[%s1291_s17 + $0x30] sm:$0xff]  ;;  %v272_v34 = vld [vmem:[%s1291_s17 + $0x38] sm:$0xff]  ;;  %v273_v38 = vld [vmem:[%s1291_s17 + $0x40] sm:$0xff]  ;;  %p1123_p3 = pnand %p1122_p2, %p1118_p13 }
  0x23   : > { %v548_v31 = vld [vmem:[%s1296_s26 + $0x30] sm:$0xff]  ;;  %v549_v35 = vld [vmem:[%s1296_s26 + $0x38] sm:$0xff]  ;;  %v550_v39 = vld [vmem:[%s1296_s26 + $0x40] sm:$0xff] }
  0x24   : > { %v290_v40 = vld [vmem:[%s1291_s17 + $0xc8] sm:$0xff]  ;;  %v291_v44 = vld [vmem:[%s1291_s17 + $0xd0] sm:$0xff]  ;;  %v292_v48 = vld [vmem:[%s1291_s17 + $0xd8] sm:$0xff] }
  0x25   : > { %987 = vmatmul.msk.f32.gmra.mxu2 %vm300_vm0, %v282_v8  ;;  %1019 = vmatmul.msk.f32.gmra.mxu3 %vm300_vm0, %v559_v9  ;;  %v567_v41 = vld [vmem:[%s1296_s26 + $0xc8] sm:$0xff]  ;;  %v568_v45 = vld [vmem:[%s1296_s26 + $0xd0] sm:$0xff]  ;;  %v569_v49 = vld [vmem:[%s1296_s26 + $0xd8] sm:$0xff] }
  0x26   : > { %v274_v42 = vld [vmem:[%s1291_s17 + $0x48] sm:$0xff]  ;;  %v275_v46 = vld [vmem:[%s1291_s17 + $0x50] sm:$0xff]  ;;  %v276_v50 = vld [vmem:[%s1291_s17 + $0x58] sm:$0xff] }
  0x27   : > { %971 = vmatmul.msk.f32.gmra.mxu0 %vm300_vm0, %v266_v10  ;;  %1003 = vmatmul.msk.f32.gmra.mxu1 %vm300_vm0, %v543_v11  ;;  %v551_v43 = vld [vmem:[%s1296_s26 + $0x48] sm:$0xff]  ;;  %v552_v47 = vld [vmem:[%s1296_s26 + $0x50] sm:$0xff]  ;;  %v553_v51 = vld [vmem:[%s1296_s26 + $0x58] sm:$0xff] }
  0x28   : > { %v293_v52 = vld [vmem:[%s1291_s17 + $0xe0] sm:$0xff]  ;;  %v294_v56 = vld [vmem:[%s1291_s17 + $0xe8] sm:$0xff]  ;;  %v295_v60 = vld [vmem:[%s1291_s17 + $0xf0] sm:$0xff] }
  0x29   : > { %v570_v53 = vld [vmem:[%s1296_s26 + $0xe0] sm:$0xff]  ;;  %v571_v57 = vld [vmem:[%s1296_s26 + $0xe8] sm:$0xff]  ;;  %v572_v61 = vld [vmem:[%s1296_s26 + $0xf0] sm:$0xff] }
  0x2a   : > { %v277_v54 = vld [vmem:[%s1291_s17 + $0x60] sm:$0xff]  ;;  %v278_v58 = vld [vmem:[%s1291_s17 + $0x68] sm:$0xff]  ;;  %v279_v62 = vld [vmem:[%s1291_s17 + $0x70] sm:$0xff] }
  0x2b   : > { %v554_v55 = vld [vmem:[%s1296_s26 + $0x60] sm:$0xff]  ;;  %v555_v59 = vld [vmem:[%s1296_s26 + $0x68] sm:$0xff]  ;;  %v556_v63 = vld [vmem:[%s1296_s26 + $0x70] sm:$0xff] }
  0x2c   : > { %v296_v0 = vld [vmem:[%s1291_s17 + $0xf8] sm:$0xff]  ;;  %v1433_v4 = vld [vmem:[%s1628_s3] ss:$0 sm:$0xff] }
  0x2d   : > { %988 = vmatmul.msk.f32.gmra.mxu2 %vm300_vm0, %v283_v12  ;;  %1020 = vmatmul.msk.f32.gmra.mxu3 %vm300_vm0, %v560_v13  ;;  %v573_v1 = vld [vmem:[%s1296_s26 + $0xf8] sm:$0xff] }
  0x2e   : > { %v280_v2 = vld [vmem:[%s1291_s17 + $0x78] sm:$0xff]  ;;  %s849_s17 = scalar_lea.hbm %s1630_s5, %s1042_s11 }
  0x2f   : > { %972 = vmatmul.msk.f32.gmra.mxu0 %vm300_vm0, %v267_v14  ;;  %1004 = vmatmul.msk.f32.gmra.mxu1 %vm300_vm0, %v544_v15  ;;  %v557_v3 = vld [vmem:[%s1296_s26 + $0x78] sm:$0xff]  ;;  %s852_s26 = sshll.u32 %s849_s17, 4  ;;  %s1579_s26 = int_to_ptr.hbm [resolvable:$true] %s852_s26 }
  0x35   : > { %989 = vmatmul.msk.f32.gmra.mxu2 %vm300_vm0, %v284_v16  ;;  %1021 = vmatmul.msk.f32.gmra.mxu3 %vm300_vm0, %v561_v17 }
  0x37   : > { %973 = vmatmul.msk.f32.gmra.mxu0 %vm300_vm0, %v268_v18  ;;  %1005 = vmatmul.msk.f32.gmra.mxu1 %vm300_vm0, %v545_v19 }
  0x3d   : > { %990 = vmatmul.msk.f32.gmra.mxu2 %vm300_vm0, %v285_v20  ;;  %1022 = vmatmul.msk.f32.gmra.mxu3 %vm300_vm0, %v562_v21 }
  0x3f   : > { %974 = vmatmul.msk.f32.gmra.mxu0 %vm300_vm0, %v269_v22  ;;  %1006 = vmatmul.msk.f32.gmra.mxu1 %vm300_vm0, %v546_v23 }
  0x45   : > { %991 = vmatmul.msk.f32.gmra.mxu2 %vm300_vm0, %v286_v24  ;;  %1023 = vmatmul.msk.f32.gmra.mxu3 %vm300_vm0, %v563_v25 }
  0x47   : > { %975 = vmatmul.msk.f32.gmra.mxu0 %vm300_vm0, %v270_v26  ;;  %1007 = vmatmul.msk.f32.gmra.mxu1 %vm300_vm0, %v547_v27 }
  0x4d   : > { %992 = vmatmul.msk.f32.gmra.mxu2 %vm300_vm0, %v287_v28  ;;  %1024 = vmatmul.msk.f32.gmra.mxu3 %vm300_vm0, %v564_v29 }
  0x4f   : > { %976 = vmatmul.msk.f32.gmra.mxu0 %vm300_vm0, %v271_v30  ;;  %1008 = vmatmul.msk.f32.gmra.mxu1 %vm300_vm0, %v548_v31 }
  0x55   : > { %993 = vmatmul.msk.f32.gmra.mxu2 %vm300_vm0, %v288_v32  ;;  %1025 = vmatmul.msk.f32.gmra.mxu3 %vm300_vm0, %v565_v33 }
  0x57   : > { %977 = vmatmul.msk.f32.gmra.mxu0 %vm300_vm0, %v272_v34  ;;  %1009 = vmatmul.msk.f32.gmra.mxu1 %vm300_vm0, %v549_v35 }
  0x5d   : > { %994 = vmatmul.msk.f32.gmra.mxu2 %vm300_vm0, %v289_v36  ;;  %1026 = vmatmul.msk.f32.gmra.mxu3 %vm300_vm0, %v566_v37 }
  0x5f   : > { %978 = vmatmul.msk.f32.gmra.mxu0 %vm300_vm0, %v273_v38  ;;  %1010 = vmatmul.msk.f32.gmra.mxu1 %vm300_vm0, %v550_v39 }
  0x65   : > { %995 = vmatmul.msk.f32.gmra.mxu2 %vm300_vm0, %v290_v40  ;;  %1027 = vmatmul.msk.f32.gmra.mxu3 %vm300_vm0, %v567_v41 }
  0x67   : > { %979 = vmatmul.msk.f32.gmra.mxu0 %vm300_vm0, %v274_v42  ;;  %1011 = vmatmul.msk.f32.gmra.mxu1 %vm300_vm0, %v551_v43 }
  0x6d   : > { %996 = vmatmul.msk.f32.gmra.mxu2 %vm300_vm0, %v291_v44  ;;  %1028 = vmatmul.msk.f32.gmra.mxu3 %vm300_vm0, %v568_v45 }
  0x6f   : > { %980 = vmatmul.msk.f32.gmra.mxu0 %vm300_vm0, %v275_v46  ;;  %1012 = vmatmul.msk.f32.gmra.mxu1 %vm300_vm0, %v552_v47 }
  0x75   : > { %997 = vmatmul.msk.f32.gmra.mxu2 %vm300_vm0, %v292_v48  ;;  %1029 = vmatmul.msk.f32.gmra.mxu3 %vm300_vm0, %v569_v49 }
  0x77   : > { %981 = vmatmul.msk.f32.gmra.mxu0 %vm300_vm0, %v276_v50  ;;  %1013 = vmatmul.msk.f32.gmra.mxu1 %vm300_vm0, %v553_v51 }
  0x7d   : > { %998 = vmatmul.msk.f32.gmra.mxu2 %vm300_vm0, %v293_v52  ;;  %1030 = vmatmul.msk.f32.gmra.mxu3 %vm300_vm0, %v570_v53 }
  0x7f   : > { %982 = vmatmul.msk.f32.gmra.mxu0 %vm300_vm0, %v277_v54  ;;  %1014 = vmatmul.msk.f32.gmra.mxu1 %vm300_vm0, %v554_v55 }
  0x85   : > { %999 = vmatmul.msk.f32.gmra.mxu2 %vm300_vm0, %v294_v56  ;;  %1031 = vmatmul.msk.f32.gmra.mxu3 %vm300_vm0, %v571_v57 }
  0x87   : > { %983 = vmatmul.msk.f32.gmra.mxu0 %vm300_vm0, %v278_v58  ;;  %1015 = vmatmul.msk.f32.gmra.mxu1 %vm300_vm0, %v555_v59 }
  0x8d   : > { %1000 = vmatmul.msk.f32.gmra.mxu2 %vm300_vm0, %v295_v60  ;;  %1032 = vmatmul.msk.f32.gmra.mxu3 %vm300_vm0, %v572_v61 }
  0x8f   : > { %984 = vmatmul.msk.f32.gmra.mxu0 %vm300_vm0, %v279_v62  ;;  %1016 = vmatmul.msk.f32.gmra.mxu1 %vm300_vm0, %v556_v63 }
  0x95   : > { %1001 = vmatmul.msk.f32.gmra.mxu2 %vm300_vm0, %v296_v0  ;;  %1033 = vmatmul.msk.f32.gmra.mxu3 %vm300_vm0, %v573_v1 }
  0x97   : > { %985 = vmatmul.msk.f32.gmra.mxu0 %vm300_vm0, %v280_v2  ;;  %1017 = vmatmul.msk.f32.gmra.mxu1 %vm300_vm0, %v557_v3 }
  0x9c   : > { %v414_v5 = vpop.f32.mrf.mxu0  ;;  %v687_v6 = vpop.f32.mrf.mxu1 }
  0x9d   : > { %v415_v7 = vadd.f32 %v1433_v4, %v414_v5  ;;  %v688_v8 = vadd.f32 %v1433_v4, %v687_v6 }
  0x9f   : > { %510 = vst [vmem:[%s1437_s9] sm:$0xff] %v415_v7 }
  0xa0   : > { %v462_v9 = vpop.f32.mrf.mxu2  ;;  %783 = vst [vmem:[%s1440_s10] sm:$0xff] %v688_v8  ;;  %v735_v10 = vpop.f32.mrf.mxu3 }
  0xa1   : > { %v463_v11 = vadd.f32 %v1433_v4, %v462_v9  ;;  %v736_v12 = vadd.f32 %v1433_v4, %v735_v10 }
  0xa3   : > { %526 = vst [vmem:[%s1437_s9 + $0x80] sm:$0xff] %v463_v11 }
  0xa4   : > { %799 = vst [vmem:[%s1440_s10 + $0x80] sm:$0xff] %v736_v12  ;;  %v417_v13 = vpop.f32.mrf.mxu0  ;;  %v690_v14 = vpop.f32.mrf.mxu1 }
  0xa5   : > { %v418_v15 = vadd.f32 %v1433_v4, %v417_v13  ;;  %v691_v16 = vadd.f32 %v1433_v4, %v690_v14 }
  0xa7   : > { %511 = vst [vmem:[%s1437_s9 + $0x8] sm:$0xff] %v418_v15 }
  0xa8   : > { %v465_v17 = vpop.f32.mrf.mxu2  ;;  %784 = vst [vmem:[%s1440_s10 + $0x8] sm:$0xff] %v691_v16  ;;  %v738_v18 = vpop.f32.mrf.mxu3 }
  0xa9   : > { %v466_v19 = vadd.f32 %v1433_v4, %v465_v17  ;;  %v739_v20 = vadd.f32 %v1433_v4, %v738_v18 }
  0xab   : > { %527 = vst [vmem:[%s1437_s9 + $0x88] sm:$0xff] %v466_v19 }
  0xac   : > { %800 = vst [vmem:[%s1440_s10 + $0x88] sm:$0xff] %v739_v20  ;;  %v420_v21 = vpop.f32.mrf.mxu0  ;;  %v693_v22 = vpop.f32.mrf.mxu1 }
  0xad   : > { %v421_v23 = vadd.f32 %v1433_v4, %v420_v21  ;;  %v694_v24 = vadd.f32 %v1433_v4, %v693_v22 }
  0xaf   : > { %512 = vst [vmem:[%s1437_s9 + $0x10] sm:$0xff] %v421_v23 }
  0xb0   : > { %v468_v25 = vpop.f32.mrf.mxu2  ;;  %785 = vst [vmem:[%s1440_s10 + $0x10] sm:$0xff] %v694_v24  ;;  %v741_v26 = vpop.f32.mrf.mxu3 }
  0xb1   : > { %v469_v27 = vadd.f32 %v1433_v4, %v468_v25  ;;  %v742_v28 = vadd.f32 %v1433_v4, %v741_v26 }
  0xb3   : > { %528 = vst [vmem:[%s1437_s9 + $0x90] sm:$0xff] %v469_v27 }
  0xb4   : > { %801 = vst [vmem:[%s1440_s10 + $0x90] sm:$0xff] %v742_v28  ;;  %v423_v29 = vpop.f32.mrf.mxu0  ;;  %v696_v30 = vpop.f32.mrf.mxu1 }
  0xb5   : > { %v424_v31 = vadd.f32 %v1433_v4, %v423_v29  ;;  %v697_v32 = vadd.f32 %v1433_v4, %v696_v30 }
  0xb7   : > { %513 = vst [vmem:[%s1437_s9 + $0x18] sm:$0xff] %v424_v31 }
  0xb8   : > { %v471_v33 = vpop.f32.mrf.mxu2  ;;  %786 = vst [vmem:[%s1440_s10 + $0x18] sm:$0xff] %v697_v32  ;;  %v744_v34 = vpop.f32.mrf.mxu3 }
  0xb9   : > { %v472_v35 = vadd.f32 %v1433_v4, %v471_v33  ;;  %v745_v36 = vadd.f32 %v1433_v4, %v744_v34 }
  0xbb   : > { %529 = vst [vmem:[%s1437_s9 + $0x98] sm:$0xff] %v472_v35 }
  0xbc   : > { %802 = vst [vmem:[%s1440_s10 + $0x98] sm:$0xff] %v745_v36  ;;  %v426_v37 = vpop.f32.mrf.mxu0  ;;  %v699_v38 = vpop.f32.mrf.mxu1 }
  0xbd   : > { %v427_v39 = vadd.f32 %v1433_v4, %v426_v37  ;;  %v700_v40 = vadd.f32 %v1433_v4, %v699_v38 }
  0xbf   : > { %514 = vst [vmem:[%s1437_s9 + $0x20] sm:$0xff] %v427_v39 }
  0xc0   : > { %v474_v41 = vpop.f32.mrf.mxu2  ;;  %787 = vst [vmem:[%s1440_s10 + $0x20] sm:$0xff] %v700_v40  ;;  %v747_v42 = vpop.f32.mrf.mxu3 }
  0xc1   : > { %v475_v43 = vadd.f32 %v1433_v4, %v474_v41  ;;  %v748_v44 = vadd.f32 %v1433_v4, %v747_v42 }
  0xc3   : > { %530 = vst [vmem:[%s1437_s9 + $0xa0] sm:$0xff] %v475_v43 }
  0xc4   : > { %803 = vst [vmem:[%s1440_s10 + $0xa0] sm:$0xff] %v748_v44  ;;  %v429_v45 = vpop.f32.mrf.mxu0  ;;  %v702_v46 = vpop.f32.mrf.mxu1 }
  0xc5   : > { %v430_v47 = vadd.f32 %v1433_v4, %v429_v45  ;;  %v703_v48 = vadd.f32 %v1433_v4, %v702_v46 }
  0xc7   : > { %515 = vst [vmem:[%s1437_s9 + $0x28] sm:$0xff] %v430_v47 }
  0xc8   : > { %v477_v49 = vpop.f32.mrf.mxu2  ;;  %788 = vst [vmem:[%s1440_s10 + $0x28] sm:$0xff] %v703_v48  ;;  %v750_v50 = vpop.f32.mrf.mxu3 }
  0xc9   : > { %v478_v51 = vadd.f32 %v1433_v4, %v477_v49  ;;  %v751_v52 = vadd.f32 %v1433_v4, %v750_v50 }
  0xcb   : > { %531 = vst [vmem:[%s1437_s9 + $0xa8] sm:$0xff] %v478_v51 }
  0xcc   : > { %804 = vst [vmem:[%s1440_s10 + $0xa8] sm:$0xff] %v751_v52  ;;  %v432_v53 = vpop.f32.mrf.mxu0  ;;  %v705_v54 = vpop.f32.mrf.mxu1 }
  0xcd   : > { %v433_v55 = vadd.f32 %v1433_v4, %v432_v53  ;;  %v706_v56 = vadd.f32 %v1433_v4, %v705_v54 }
  0xcf   : > { %516 = vst [vmem:[%s1437_s9 + $0x30] sm:$0xff] %v433_v55 }
  0xd0   : > { %v480_v57 = vpop.f32.mrf.mxu2  ;;  %789 = vst [vmem:[%s1440_s10 + $0x30] sm:$0xff] %v706_v56  ;;  %v753_v58 = vpop.f32.mrf.mxu3 }
  0xd1   : > { %v481_v59 = vadd.f32 %v1433_v4, %v480_v57  ;;  %v754_v60 = vadd.f32 %v1433_v4, %v753_v58 }
  0xd3   : > { %532 = vst [vmem:[%s1437_s9 + $0xb0] sm:$0xff] %v481_v59 }
  0xd4   : > { %805 = vst [vmem:[%s1440_s10 + $0xb0] sm:$0xff] %v754_v60  ;;  %v435_v61 = vpop.f32.mrf.mxu0  ;;  %v708_v62 = vpop.f32.mrf.mxu1 }
  0xd5   : > { %v436_v63 = vadd.f32 %v1433_v4, %v435_v61  ;;  %v709_v0 = vadd.f32 %v1433_v4, %v708_v62 }
  0xd7   : > { %517 = vst [vmem:[%s1437_s9 + $0x38] sm:$0xff] %v436_v63 }
  0xd8   : > { %v483_v1 = vpop.f32.mrf.mxu2  ;;  %790 = vst [vmem:[%s1440_s10 + $0x38] sm:$0xff] %v709_v0  ;;  %v756_v2 = vpop.f32.mrf.mxu3 }
  0xd9   : > { %v484_v3 = vadd.f32 %v1433_v4, %v483_v1  ;;  %v757_v5 = vadd.f32 %v1433_v4, %v756_v2 }
  0xdb   : > { %533 = vst [vmem:[%s1437_s9 + $0xb8] sm:$0xff] %v484_v3 }
  0xdc   : > { %806 = vst [vmem:[%s1440_s10 + $0xb8] sm:$0xff] %v757_v5  ;;  %v438_v6 = vpop.f32.mrf.mxu0  ;;  %v711_v7 = vpop.f32.mrf.mxu1 }
  0xdd   : > { %v439_v8 = vadd.f32 %v1433_v4, %v438_v6  ;;  %v712_v9 = vadd.f32 %v1433_v4, %v711_v7 }
  0xdf   : > { %518 = vst [vmem:[%s1437_s9 + $0x40] sm:$0xff] %v439_v8 }
  0xe0   : > { %v486_v10 = vpop.f32.mrf.mxu2  ;;  %791 = vst [vmem:[%s1440_s10 + $0x40] sm:$0xff] %v712_v9  ;;  %v759_v11 = vpop.f32.mrf.mxu3 }
  0xe1   : > { %v487_v12 = vadd.f32 %v1433_v4, %v486_v10  ;;  %v760_v13 = vadd.f32 %v1433_v4, %v759_v11 }
  0xe3   : > { %534 = vst [vmem:[%s1437_s9 + $0xc0] sm:$0xff] %v487_v12 }
  0xe4   : > { %807 = vst [vmem:[%s1440_s10 + $0xc0] sm:$0xff] %v760_v13  ;;  %v441_v14 = vpop.f32.mrf.mxu0  ;;  %v714_v15 = vpop.f32.mrf.mxu1 }
  0xe5   : > { %v442_v16 = vadd.f32 %v1433_v4, %v441_v14  ;;  %v715_v17 = vadd.f32 %v1433_v4, %v714_v15 }
  0xe7   : > { %519 = vst [vmem:[%s1437_s9 + $0x48] sm:$0xff] %v442_v16 }
  0xe8   : > { %v489_v18 = vpop.f32.mrf.mxu2  ;;  %792 = vst [vmem:[%s1440_s10 + $0x48] sm:$0xff] %v715_v17  ;;  %v762_v19 = vpop.f32.mrf.mxu3 }
  0xe9   : > { %v490_v20 = vadd.f32 %v1433_v4, %v489_v18  ;;  %v763_v21 = vadd.f32 %v1433_v4, %v762_v19 }
  0xeb   : > { %535 = vst [vmem:[%s1437_s9 + $0xc8] sm:$0xff] %v490_v20 }
  0xec   : > { %808 = vst [vmem:[%s1440_s10 + $0xc8] sm:$0xff] %v763_v21  ;;  %v444_v22 = vpop.f32.mrf.mxu0  ;;  %v717_v23 = vpop.f32.mrf.mxu1 }
  0xed   : > { %v445_v24 = vadd.f32 %v1433_v4, %v444_v22  ;;  %v718_v25 = vadd.f32 %v1433_v4, %v717_v23 }
  0xef   : > { %520 = vst [vmem:[%s1437_s9 + $0x50] sm:$0xff] %v445_v24 }
  0xf0   : > { %v492_v26 = vpop.f32.mrf.mxu2  ;;  %793 = vst [vmem:[%s1440_s10 + $0x50] sm:$0xff] %v718_v25  ;;  %v765_v27 = vpop.f32.mrf.mxu3 }
  0xf1   : > { %v493_v28 = vadd.f32 %v1433_v4, %v492_v26  ;;  %v766_v29 = vadd.f32 %v1433_v4, %v765_v27 }
  0xf3   : > { %536 = vst [vmem:[%s1437_s9 + $0xd0] sm:$0xff] %v493_v28 }
  0xf4   : > { %809 = vst [vmem:[%s1440_s10 + $0xd0] sm:$0xff] %v766_v29  ;;  %v447_v30 = vpop.f32.mrf.mxu0  ;;  %v720_v31 = vpop.f32.mrf.mxu1 }
  0xf5   : > { %v448_v32 = vadd.f32 %v1433_v4, %v447_v30  ;;  %v721_v33 = vadd.f32 %v1433_v4, %v720_v31 }
  0xf7   : > { %521 = vst [vmem:[%s1437_s9 + $0x58] sm:$0xff] %v448_v32 }
  0xf8   : > { %v495_v34 = vpop.f32.mrf.mxu2  ;;  %794 = vst [vmem:[%s1440_s10 + $0x58] sm:$0xff] %v721_v33  ;;  %v768_v35 = vpop.f32.mrf.mxu3 }
  0xf9   : > { %v496_v36 = vadd.f32 %v1433_v4, %v495_v34  ;;  %v769_v37 = vadd.f32 %v1433_v4, %v768_v35 }
  0xfb   : > { %537 = vst [vmem:[%s1437_s9 + $0xd8] sm:$0xff] %v496_v36 }
  0xfc   : > { %810 = vst [vmem:[%s1440_s10 + $0xd8] sm:$0xff] %v769_v37  ;;  %v450_v38 = vpop.f32.mrf.mxu0  ;;  %v723_v39 = vpop.f32.mrf.mxu1 }
  0xfd   : > { %v451_v40 = vadd.f32 %v1433_v4, %v450_v38  ;;  %v724_v41 = vadd.f32 %v1433_v4, %v723_v39 }
  0xff   : > { %522 = vst [vmem:[%s1437_s9 + $0x60] sm:$0xff] %v451_v40 }
 0x100   : > { %v498_v42 = vpop.f32.mrf.mxu2  ;;  %795 = vst [vmem:[%s1440_s10 + $0x60] sm:$0xff] %v724_v41  ;;  %v771_v43 = vpop.f32.mrf.mxu3 }
 0x101   : > { %v499_v44 = vadd.f32 %v1433_v4, %v498_v42  ;;  %v772_v45 = vadd.f32 %v1433_v4, %v771_v43 }
 0x103   : > { %538 = vst [vmem:[%s1437_s9 + $0xe0] sm:$0xff] %v499_v44 }
 0x104   : > { %811 = vst [vmem:[%s1440_s10 + $0xe0] sm:$0xff] %v772_v45  ;;  %v453_v46 = vpop.f32.mrf.mxu0  ;;  %v726_v47 = vpop.f32.mrf.mxu1 }
 0x105   : > { %v454_v48 = vadd.f32 %v1433_v4, %v453_v46  ;;  %v727_v49 = vadd.f32 %v1433_v4, %v726_v47 }
 0x107   : > { %523 = vst [vmem:[%s1437_s9 + $0x68] sm:$0xff] %v454_v48 }
 0x108   : > { %v501_v50 = vpop.f32.mrf.mxu2  ;;  %796 = vst [vmem:[%s1440_s10 + $0x68] sm:$0xff] %v727_v49  ;;  %v774_v51 = vpop.f32.mrf.mxu3 }
 0x109   : > { %v502_v52 = vadd.f32 %v1433_v4, %v501_v50  ;;  %v775_v53 = vadd.f32 %v1433_v4, %v774_v51 }
 0x10b   : > { %539 = vst [vmem:[%s1437_s9 + $0xe8] sm:$0xff] %v502_v52 }
 0x10c   : > { %812 = vst [vmem:[%s1440_s10 + $0xe8] sm:$0xff] %v775_v53  ;;  %v456_v54 = vpop.f32.mrf.mxu0  ;;  %v729_v55 = vpop.f32.mrf.mxu1 }
 0x10d   : > { %v457_v56 = vadd.f32 %v1433_v4, %v456_v54  ;;  %v730_v57 = vadd.f32 %v1433_v4, %v729_v55 }
 0x10f   : > { %524 = vst [vmem:[%s1437_s9 + $0x70] sm:$0xff] %v457_v56 }
 0x110   : > { %v504_v58 = vpop.f32.mrf.mxu2  ;;  %797 = vst [vmem:[%s1440_s10 + $0x70] sm:$0xff] %v730_v57  ;;  %v777_v59 = vpop.f32.mrf.mxu3 }
 0x111   : > { %v505_v60 = vadd.f32 %v1433_v4, %v504_v58  ;;  %v778_v61 = vadd.f32 %v1433_v4, %v777_v59 }
 0x113   : > { %540 = vst [vmem:[%s1437_s9 + $0xf0] sm:$0xff] %v505_v60 }
 0x114   : > { %813 = vst [vmem:[%s1440_s10 + $0xf0] sm:$0xff] %v778_v61  ;;  %v459_v62 = vpop.f32.mrf.mxu0  ;;  %v732_v63 = vpop.f32.mrf.mxu1 }
 0x115   : > { %v460_v0 = vadd.f32 %v1433_v4, %v459_v62  ;;  %v733_v1 = vadd.f32 %v1433_v4, %v732_v63 }
 0x117   : > { %525 = vst [vmem:[%s1437_s9 + $0x78] sm:$0xff] %v460_v0 }
 0x118   : > { %v507_v2 = vpop.f32.mrf.mxu2  ;;  %798 = vst [vmem:[%s1440_s10 + $0x78] sm:$0xff] %v733_v1  ;;  %v780_v3 = vpop.f32.mrf.mxu3 }
 0x119   : > { %v508_v5 = vadd.f32 %v1433_v4, %v507_v2  ;;  %v781_v6 = vadd.f32 %v1433_v4, %v780_v3 }
 0x11b   : > { %541 = vst [vmem:[%s1437_s9 + $0xf8] sm:$0xff] %v508_v5 }
 0x11c   : > { %814 = vst [vmem:[%s1440_s10 + $0xf8] sm:$0xff] %v781_v6 }
 0x11d   : > { %1126 = shalt.err (!%p1123_p3)
}
 0x11e   : > { %s1195_s9 = smov 128   ;;  %s1196_s10 = smov 8  }
 0x11f   : > { %1052 = dma.vmem_to_hbm [thread:$0]  (%p1265_p5), %s1570_s15, 4096, %s836_s23, %s816_s6, %s1195_s9, %s1195_s9, %s1196_s10  }
 0x120   : > { %s821_s16 = scalar_lea.sflag [#allocation5], %s1425_s30  ;;  %s1141_s17 = sshra.s32 %s1579_s26, 4  ;;  %s1142_s17 = int_to_ptr.hbm [resolvable:$true] %s1141_s17 }
 0x121   : > { %s1143_s11 = scalar_lea.hbm %s1142_s17, 256  ;;  %s1147_s12 = scalar_lea.hbm %s1630_s5, 1024 }
 0x122   : > { %p1144_p4 = scmp.ne.s32.totalorder %s1142_s17, %s1143_s11  ;;  %p1148_p9 = scmp.lt.s32.totalorder %s1142_s17, %s1630_s5 }
 0x123   : > { %p1149_p10 = scmp.lt.s32.totalorder %s1147_s12, %s1143_s11 }
 0x124   : > { %p1145_p7 = pnand %p1144_p4, %p1265_p5 }
 0x125   : > { %p1150_p11 = por %p1149_p10, %p1148_p9 }
 0x126   : > { %p1146_p8 = pneg %p1145_p7 }
 0x128   : > { %p1151_p12 = pnand %p1150_p11, %p1146_p8 }
 0x12a   : > { %1154 = shalt.err (!%p1151_p12)
}
 0x12b   : > { %1053 = dma.vmem_to_hbm [thread:$0]  (%p1265_p5), %s1577_s25, 4096, %s1579_s26, %s821_s16, %s1195_s9, %s1195_s9, %s1196_s10  }
 0x12c PF: > { %p1063_p13 = scmp.ge.s32.totalorder %s1193_s21, 2  ;;  %s867_s30 = sand.u32 1, %s1181_s18  }
 0x12d   : > { %s868_s15 = scalar_lea.sflag [#allocation3], %s867_s30 }
 0x12e   : > { %p1057_p0 = pnand %p1063_p13, %p1269_p6 }
 0x130   : > { %p1058_p1 = pneg %p1057_p0 }
 0x132   : > { %1172 = dma.done.wait (%p1058_p1), %s868_s15, 4096  }
 0x133   : > { %1174 = vsyncadd (%p1058_p1), %s868_s15, 4294963200  ;;  %s878_s23 = scalar_lea.sflag [#allocation5], %s867_s30 }
 0x134   : > { %1176 = dma.done.wait (%p1058_p1), %s878_s23, 4096  }
 0x135   : > { %1178 = vsyncadd (%p1058_p1), %s878_s23, 4294963200  ;;  %p19_p5 = scmp.ge.s32.totalorder %s1252_s24, 6   ;;  %s1633_s18 = smov %s1185_s19 }
 0x136   : > { %s1634_s19 = smov %s1189_s20  ;;  %s1635_s20 = smov %s1263_s27 }
 0x137   : > { %s1636_s21 = smov %s1252_s24  ;;  %21 = sbr.rel (!%p19_p5) target bundleno = 5 (0x5), region = 91 }
 0x13c   :  { %884 = vsyncpa [#allocation3], 1 }
 0x13d   :  { %886 = vsyncpa [#allocation3 + $0x1], 1 }
 0x13e   :  { %887 = vsyncpa [#allocation5], 1 }
 0x13f   :  { %889 = vsyncpa [#allocation5 + $0x1], 1 }

</bundles_post_ra>
